<compile_context>
chip_gen: v7x
topology: tpu7x:2x2x1
jax: 0.10.0
libtpu: 0.0.40
codegen_flags: <defaults>
</compile_context>

<pallas_src>
import jax
import jax.numpy as jnp
from jax.experimental import pallas as pl
from jax.experimental.pallas import tpu as pltpu

_INV_SCALE = 1.0 / 1.618
_CENTER_TAP = 4  # (dh, dw) = (1, 1) in dh*3 + dw ordering


def _conv2dm3_kernel(taps_ref, wq_ref, bq_ref, wk_ref, bk_ref, wv_ref, bv_ref,
                     o_ref):
    # taps_ref: (1, 9, C, HW) VMEM  -- 9 shifted copies of x (replicate-padded)
    # wq/wv:    (C, C) VMEM, wk: (C, 9) VMEM, biases: (C, 1) VMEM
    # o_ref:    (1, C, HW) VMEM
    C = o_ref.shape[1]
    f32 = jnp.float32

    # Center tap (dh=1, dw=1) is exactly the unpadded input; reuse it for the
    # two 1x1 convs and the middle depthwise tap so x is loaded once.
    x = taps_ref[0, _CENTER_TAP, :, :].astype(f32)          # (C, HW)

    # --- 1x1 "query" / "value" convs: outer-product accumulation unrolled over
    # input channels; each term is a (C,1)x(1,HW) broadcast FMA on the VPU.
    q = bq_ref[...].astype(f32)                              # (C, 1) -> bcast
    v = bv_ref[...].astype(f32)
    for c in range(C):
        xc = x[c:c + 1, :]                                   # (1, HW)
        q = q + wq_ref[:, c:c + 1].astype(f32) * xc          # (C, HW)
        v = v + wv_ref[:, c:c + 1].astype(f32) * xc

    # --- depthwise 3x3 "key" conv: per-channel weights broadcast along lanes,
    # one FMA per tap over the full (C, HW) slab.
    k = bk_ref[...].astype(f32)                              # (C, 1) -> bcast
    for t in range(9):
        tap = x if t == _CENTER_TAP else taps_ref[0, t, :, :].astype(f32)
        k = k + wk_ref[:, t:t + 1].astype(f32) * tap         # (C, HW)

    o_ref[0, :, :] = (q * k * v * _INV_SCALE).astype(o_ref.dtype)


def conv2dm3(x, wq, bq, wk, bk, wv, bv):
    """Conv2dM3 forward: (1x1 conv) * (depthwise 3x3, replicate pad) * (1x1 conv) / 1.618."""
    N, C, H, W = x.shape
    assert wq.shape == (C, C) and wv.shape == (C, C)
    assert wk.shape == (C, 3, 3)
    assert bq.shape == (C,) and bk.shape == (C,) and bv.shape == (C,)
    HW = H * W

    # Replicate padding (padding_mode='replicate') + extraction of the nine
    # shifted depthwise taps, done once in the wrapper: layout plumbing only,
    # no arithmetic is hoisted out of the kernel.
    xpad = jnp.pad(x, ((0, 0), (0, 0), (1, 1), (1, 1)), mode="edge")
    taps = jnp.stack(
        [xpad[:, :, dh:dh + H, dw:dw + W] for dh in range(3) for dw in range(3)],
        axis=1,
    ).reshape(N, 9, C, HW)                                   # (N, 9, C, HW)

    wk_flat = wk.reshape(C, 9)
    bq2, bk2, bv2 = bq.reshape(C, 1), bk.reshape(C, 1), bv.reshape(C, 1)

    out_flat = pl.pallas_call(
        _conv2dm3_kernel,
        out_shape=jax.ShapeDtypeStruct((N, C, HW), x.dtype),
        grid_spec=pltpu.PrefetchScalarGridSpec(
            num_scalar_prefetch=0,
            grid=(N,),
            in_specs=[
                pl.BlockSpec((1, 9, C, HW), lambda n: (n, 0, 0, 0)),  # taps
                pl.BlockSpec((C, C), lambda n: (0, 0)),               # wq
                pl.BlockSpec((C, 1), lambda n: (0, 0)),               # bq
                pl.BlockSpec((C, 9), lambda n: (0, 0)),               # wk
                pl.BlockSpec((C, 1), lambda n: (0, 0)),               # bk
                pl.BlockSpec((C, C), lambda n: (0, 0)),               # wv
                pl.BlockSpec((C, 1), lambda n: (0, 0)),               # bv
            ],
            out_specs=pl.BlockSpec((1, C, HW), lambda n: (n, 0, 0)),
        ),
        compiler_params=pltpu.CompilerParams(
            dimension_semantics=("parallel",),
        ),
    )(taps, wq, bq2, wk_flat, bk2, wv, bv2)

    return out_flat.reshape(N, C, H, W)


def _conv2dm3_ref(x, wq, bq, wk, bk, wv, bv):
    """Pure-JAX reference matching the PyTorch module's forward."""
    H, W = x.shape[2], x.shape[3]
    q = jnp.einsum("oc,nchw->nohw", wq, x) + bq[None, :, None, None]
    v = jnp.einsum("oc,nchw->nohw", wv, x) + bv[None, :, None, None]
    xpad = jnp.pad(x, ((0, 0), (0, 0), (1, 1), (1, 1)), mode="edge")
    k = jnp.broadcast_to(bk[None, :, None, None], x.shape)
    for dh in range(3):
        for dw in range(3):
            k = k + wk[None, :, dh, dw, None, None] * xpad[:, :, dh:dh + H, dw:dw + W]
    return q * k * v / 1.618


if __name__ == "__main__":
    key = jax.random.PRNGKey(0)
    kx, kq, kbq, kk, kbk, kv, kbv = jax.random.split(key, 7)

    N, C, H, W = 2, 4, 16, 16  # batch=2, n_dims=4, spatial=16
    x = jax.random.normal(kx, (N, C, H, W), dtype=jnp.float32)
    wq = 0.3 * jax.random.normal(kq, (C, C), dtype=jnp.float32)
    bq = 0.1 * jax.random.normal(kbq, (C,), dtype=jnp.float32)
    wk = 0.3 * jax.random.normal(kk, (C, 3, 3), dtype=jnp.float32)
    bk = 0.1 * jax.random.normal(kbk, (C,), dtype=jnp.float32)
    wv = 0.3 * jax.random.normal(kv, (C, C), dtype=jnp.float32)
    bv = 0.1 * jax.random.normal(kbv, (C,), dtype=jnp.float32)

    y = conv2dm3(x, wq, bq, wk, bk, wv, bv)
    y = jax.block_until_ready(y)

    y_ref = _conv2dm3_ref(x, wq, bq, wk, bk, wv, bv)
    assert y.shape == x.shape and y.dtype == x.dtype
    max_err = float(jnp.max(jnp.abs(y - y_ref)))
    assert max_err < 1e-3, f"max abs error {max_err}"

    print("KERNEL_OK")
</pallas_src>

<mosaic_0001>
module attributes {stable_mosaic.version = 11 : i64} {
  func.func @_conv2dm3_kernel(%arg0: i32, %arg1: memref<1x9x4x256xf32, #tpu.memory_space<vmem>>, %arg2: memref<4x4xf32, #tpu.memory_space<vmem>>, %arg3: memref<4x1xf32, #tpu.memory_space<vmem>>, %arg4: memref<4x9xf32, #tpu.memory_space<vmem>>, %arg5: memref<4x1xf32, #tpu.memory_space<vmem>>, %arg6: memref<4x4xf32, #tpu.memory_space<vmem>>, %arg7: memref<4x1xf32, #tpu.memory_space<vmem>>, %arg8: memref<1x4x256xf32, #tpu.memory_space<vmem>>) attributes {dimension_semantics = [#tpu.dimension_semantics<parallel>], iteration_bounds = array<i64: 2>, scalar_prefetch = 0 : i64, scratch_operands = 0 : i64, tpu.core_type = #tpu.core_type<tc>, window_params = [{transform_indices = @transform_0, window_bounds = array<i64: 1, 9, 4, 256>}, {pipeline_mode = #tpu.pipeline_mode<synchronous>, transform_indices = @transform_1, window_bounds = array<i64: 4, 4>}, {pipeline_mode = #tpu.pipeline_mode<synchronous>, transform_indices = @transform_2, window_bounds = array<i64: 4, 1>}, {pipeline_mode = #tpu.pipeline_mode<synchronous>, transform_indices = @transform_3, window_bounds = array<i64: 4, 9>}, {pipeline_mode = #tpu.pipeline_mode<synchronous>, transform_indices = @transform_4, window_bounds = array<i64: 4, 1>}, {pipeline_mode = #tpu.pipeline_mode<synchronous>, transform_indices = @transform_5, window_bounds = array<i64: 4, 4>}, {pipeline_mode = #tpu.pipeline_mode<synchronous>, transform_indices = @transform_6, window_bounds = array<i64: 4, 1>}, {transform_indices = @transform_7, window_bounds = array<i64: 1, 4, 256>}]} {
    %c0 = arith.constant 0 : index
    %c4 = arith.constant 4 : index
    %c0_0 = arith.constant 0 : index
    %c0_1 = arith.constant 0 : index
    %0 = vector.load %arg1[%c0, %c4, %c0_0, %c0_1] : memref<1x9x4x256xf32, #tpu.memory_space<vmem>>, vector<1x1x4x256xf32>
    %1 = vector.shape_cast %0 : vector<1x1x4x256xf32> to vector<4x256xf32>
    %c0_2 = arith.constant 0 : index
    %c0_3 = arith.constant 0 : index
    %2 = vector.load %arg3[%c0_2, %c0_3] : memref<4x1xf32, #tpu.memory_space<vmem>>, vector<4x1xf32>
    %c0_4 = arith.constant 0 : index
    %c0_5 = arith.constant 0 : index
    %3 = vector.load %arg7[%c0_4, %c0_5] : memref<4x1xf32, #tpu.memory_space<vmem>>, vector<4x1xf32>
    %4 = vector.extract_strided_slice %1 {offsets = [0, 0], sizes = [1, 256], strides = [1, 1]} : vector<4x256xf32> to vector<1x256xf32>
    %c0_6 = arith.constant 0 : index
    %c0_7 = arith.constant 0 : index
    %5 = vector.load %arg2[%c0_6, %c0_7] : memref<4x4xf32, #tpu.memory_space<vmem>>, vector<4x1xf32>
    %6 = vector.broadcast %5 : vector<4x1xf32> to vector<4x256xf32>
    %7 = vector.broadcast %4 : vector<1x256xf32> to vector<4x256xf32>
    %8 = arith.mulf %6, %7 : vector<4x256xf32>
    %9 = vector.broadcast %2 : vector<4x1xf32> to vector<4x256xf32>
    %10 = arith.addf %9, %8 : vector<4x256xf32>
    %c0_8 = arith.constant 0 : index
    %c0_9 = arith.constant 0 : index
    %11 = vector.load %arg6[%c0_8, %c0_9] : memref<4x4xf32, #tpu.memory_space<vmem>>, vector<4x1xf32>
    %12 = vector.broadcast %11 : vector<4x1xf32> to vector<4x256xf32>
    %13 = vector.broadcast %4 : vector<1x256xf32> to vector<4x256xf32>
    %14 = arith.mulf %12, %13 : vector<4x256xf32>
    %15 = vector.broadcast %3 : vector<4x1xf32> to vector<4x256xf32>
    %16 = arith.addf %15, %14 : vector<4x256xf32>
    %17 = vector.extract_strided_slice %1 {offsets = [1, 0], sizes = [1, 256], strides = [1, 1]} : vector<4x256xf32> to vector<1x256xf32>
    %c0_10 = arith.constant 0 : index
    %c1 = arith.constant 1 : index
    %18 = vector.load %arg2[%c0_10, %c1] : memref<4x4xf32, #tpu.memory_space<vmem>>, vector<4x1xf32>
    %19 = vector.broadcast %18 : vector<4x1xf32> to vector<4x256xf32>
    %20 = vector.broadcast %17 : vector<1x256xf32> to vector<4x256xf32>
    %21 = arith.mulf %19, %20 : vector<4x256xf32>
    %22 = arith.addf %10, %21 : vector<4x256xf32>
    %c0_11 = arith.constant 0 : index
    %c1_12 = arith.constant 1 : index
    %23 = vector.load %arg6[%c0_11, %c1_12] : memref<4x4xf32, #tpu.memory_space<vmem>>, vector<4x1xf32>
    %24 = vector.broadcast %23 : vector<4x1xf32> to vector<4x256xf32>
    %25 = vector.broadcast %17 : vector<1x256xf32> to vector<4x256xf32>
    %26 = arith.mulf %24, %25 : vector<4x256xf32>
    %27 = arith.addf %16, %26 : vector<4x256xf32>
    %28 = vector.extract_strided_slice %1 {offsets = [2, 0], sizes = [1, 256], strides = [1, 1]} : vector<4x256xf32> to vector<1x256xf32>
    %c0_13 = arith.constant 0 : index
    %c2 = arith.constant 2 : index
    %29 = vector.load %arg2[%c0_13, %c2] : memref<4x4xf32, #tpu.memory_space<vmem>>, vector<4x1xf32>
    %30 = vector.broadcast %29 : vector<4x1xf32> to vector<4x256xf32>
    %31 = vector.broadcast %28 : vector<1x256xf32> to vector<4x256xf32>
    %32 = arith.mulf %30, %31 : vector<4x256xf32>
    %33 = arith.addf %22, %32 : vector<4x256xf32>
    %c0_14 = arith.constant 0 : index
    %c2_15 = arith.constant 2 : index
    %34 = vector.load %arg6[%c0_14, %c2_15] : memref<4x4xf32, #tpu.memory_space<vmem>>, vector<4x1xf32>
    %35 = vector.broadcast %34 : vector<4x1xf32> to vector<4x256xf32>
    %36 = vector.broadcast %28 : vector<1x256xf32> to vector<4x256xf32>
    %37 = arith.mulf %35, %36 : vector<4x256xf32>
    %38 = arith.addf %27, %37 : vector<4x256xf32>
    %39 = vector.extract_strided_slice %1 {offsets = [3, 0], sizes = [1, 256], strides = [1, 1]} : vector<4x256xf32> to vector<1x256xf32>
    %c0_16 = arith.constant 0 : index
    %c3 = arith.constant 3 : index
    %40 = vector.load %arg2[%c0_16, %c3] : memref<4x4xf32, #tpu.memory_space<vmem>>, vector<4x1xf32>
    %41 = vector.broadcast %40 : vector<4x1xf32> to vector<4x256xf32>
    %42 = vector.broadcast %39 : vector<1x256xf32> to vector<4x256xf32>
    %43 = arith.mulf %41, %42 : vector<4x256xf32>
    %44 = arith.addf %33, %43 : vector<4x256xf32>
    %c0_17 = arith.constant 0 : index
    %c3_18 = arith.constant 3 : index
    %45 = vector.load %arg6[%c0_17, %c3_18] : memref<4x4xf32, #tpu.memory_space<vmem>>, vector<4x1xf32>
    %46 = vector.broadcast %45 : vector<4x1xf32> to vector<4x256xf32>
    %47 = vector.broadcast %39 : vector<1x256xf32> to vector<4x256xf32>
    %48 = arith.mulf %46, %47 : vector<4x256xf32>
    %49 = arith.addf %38, %48 : vector<4x256xf32>
    %c0_19 = arith.constant 0 : index
    %c0_20 = arith.constant 0 : index
    %50 = vector.load %arg5[%c0_19, %c0_20] : memref<4x1xf32, #tpu.memory_space<vmem>>, vector<4x1xf32>
    %c0_21 = arith.constant 0 : index
    %c0_22 = arith.constant 0 : index
    %c0_23 = arith.constant 0 : index
    %c0_24 = arith.constant 0 : index
    %51 = vector.load %arg1[%c0_21, %c0_22, %c0_23, %c0_24] : memref<1x9x4x256xf32, #tpu.memory_space<vmem>>, vector<1x1x4x256xf32>
    %52 = vector.shape_cast %51 : vector<1x1x4x256xf32> to vector<4x256xf32>
    %c0_25 = arith.constant 0 : index
    %c0_26 = arith.constant 0 : index
    %53 = vector.load %arg4[%c0_25, %c0_26] : memref<4x9xf32, #tpu.memory_space<vmem>>, vector<4x1xf32>
    %54 = vector.broadcast %53 : vector<4x1xf32> to vector<4x256xf32>
    %55 = arith.mulf %54, %52 : vector<4x256xf32>
    %56 = vector.broadcast %50 : vector<4x1xf32> to vector<4x256xf32>
    %57 = arith.addf %56, %55 : vector<4x256xf32>
    %c0_27 = arith.constant 0 : index
    %c1_28 = arith.constant 1 : index
    %c0_29 = arith.constant 0 : index
    %c0_30 = arith.constant 0 : index
    %58 = vector.load %arg1[%c0_27, %c1_28, %c0_29, %c0_30] : memref<1x9x4x256xf32, #tpu.memory_space<vmem>>, vector<1x1x4x256xf32>
    %59 = vector.shape_cast %58 : vector<1x1x4x256xf32> to vector<4x256xf32>
    %c0_31 = arith.constant 0 : index
    %c1_32 = arith.constant 1 : index
    %60 = vector.load %arg4[%c0_31, %c1_32] : memref<4x9xf32, #tpu.memory_space<vmem>>, vector<4x1xf32>
    %61 = vector.broadcast %60 : vector<4x1xf32> to vector<4x256xf32>
    %62 = arith.mulf %61, %59 : vector<4x256xf32>
    %63 = arith.addf %57, %62 : vector<4x256xf32>
    %c0_33 = arith.constant 0 : index
    %c2_34 = arith.constant 2 : index
    %c0_35 = arith.constant 0 : index
    %c0_36 = arith.constant 0 : index
    %64 = vector.load %arg1[%c0_33, %c2_34, %c0_35, %c0_36] : memref<1x9x4x256xf32, #tpu.memory_space<vmem>>, vector<1x1x4x256xf32>
    %65 = vector.shape_cast %64 : vector<1x1x4x256xf32> to vector<4x256xf32>
    %c0_37 = arith.constant 0 : index
    %c2_38 = arith.constant 2 : index
    %66 = vector.load %arg4[%c0_37, %c2_38] : memref<4x9xf32, #tpu.memory_space<vmem>>, vector<4x1xf32>
    %67 = vector.broadcast %66 : vector<4x1xf32> to vector<4x256xf32>
    %68 = arith.mulf %67, %65 : vector<4x256xf32>
    %69 = arith.addf %63, %68 : vector<4x256xf32>
    %c0_39 = arith.constant 0 : index
    %c3_40 = arith.constant 3 : index
    %c0_41 = arith.constant 0 : index
    %c0_42 = arith.constant 0 : index
    %70 = vector.load %arg1[%c0_39, %c3_40, %c0_41, %c0_42] : memref<1x9x4x256xf32, #tpu.memory_space<vmem>>, vector<1x1x4x256xf32>
    %71 = vector.shape_cast %70 : vector<1x1x4x256xf32> to vector<4x256xf32>
    %c0_43 = arith.constant 0 : index
    %c3_44 = arith.constant 3 : index
    %72 = vector.load %arg4[%c0_43, %c3_44] : memref<4x9xf32, #tpu.memory_space<vmem>>, vector<4x1xf32>
    %73 = vector.broadcast %72 : vector<4x1xf32> to vector<4x256xf32>
    %74 = arith.mulf %73, %71 : vector<4x256xf32>
    %75 = arith.addf %69, %74 : vector<4x256xf32>
    %c0_45 = arith.constant 0 : index
    %c4_46 = arith.constant 4 : index
    %76 = vector.load %arg4[%c0_45, %c4_46] : memref<4x9xf32, #tpu.memory_space<vmem>>, vector<4x1xf32>
    %77 = vector.broadcast %76 : vector<4x1xf32> to vector<4x256xf32>
    %78 = arith.mulf %77, %1 : vector<4x256xf32>
    %79 = arith.addf %75, %78 : vector<4x256xf32>
    %c0_47 = arith.constant 0 : index
    %c5 = arith.constant 5 : index
    %c0_48 = arith.constant 0 : index
    %c0_49 = arith.constant 0 : index
    %80 = vector.load %arg1[%c0_47, %c5, %c0_48, %c0_49] : memref<1x9x4x256xf32, #tpu.memory_space<vmem>>, vector<1x1x4x256xf32>
    %81 = vector.shape_cast %80 : vector<1x1x4x256xf32> to vector<4x256xf32>
    %c0_50 = arith.constant 0 : index
    %c5_51 = arith.constant 5 : index
    %82 = vector.load %arg4[%c0_50, %c5_51] : memref<4x9xf32, #tpu.memory_space<vmem>>, vector<4x1xf32>
    %83 = vector.broadcast %82 : vector<4x1xf32> to vector<4x256xf32>
    %84 = arith.mulf %83, %81 : vector<4x256xf32>
    %85 = arith.addf %79, %84 : vector<4x256xf32>
    %c0_52 = arith.constant 0 : index
    %c6 = arith.constant 6 : index
    %c0_53 = arith.constant 0 : index
    %c0_54 = arith.constant 0 : index
    %86 = vector.load %arg1[%c0_52, %c6, %c0_53, %c0_54] : memref<1x9x4x256xf32, #tpu.memory_space<vmem>>, vector<1x1x4x256xf32>
    %87 = vector.shape_cast %86 : vector<1x1x4x256xf32> to vector<4x256xf32>
    %c0_55 = arith.constant 0 : index
    %c6_56 = arith.constant 6 : index
    %88 = vector.load %arg4[%c0_55, %c6_56] : memref<4x9xf32, #tpu.memory_space<vmem>>, vector<4x1xf32>
    %89 = vector.broadcast %88 : vector<4x1xf32> to vector<4x256xf32>
    %90 = arith.mulf %89, %87 : vector<4x256xf32>
    %91 = arith.addf %85, %90 : vector<4x256xf32>
    %c0_57 = arith.constant 0 : index
    %c7 = arith.constant 7 : index
    %c0_58 = arith.constant 0 : index
    %c0_59 = arith.constant 0 : index
    %92 = vector.load %arg1[%c0_57, %c7, %c0_58, %c0_59] : memref<1x9x4x256xf32, #tpu.memory_space<vmem>>, vector<1x1x4x256xf32>
    %93 = vector.shape_cast %92 : vector<1x1x4x256xf32> to vector<4x256xf32>
    %c0_60 = arith.constant 0 : index
    %c7_61 = arith.constant 7 : index
    %94 = vector.load %arg4[%c0_60, %c7_61] : memref<4x9xf32, #tpu.memory_space<vmem>>, vector<4x1xf32>
    %95 = vector.broadcast %94 : vector<4x1xf32> to vector<4x256xf32>
    %96 = arith.mulf %95, %93 : vector<4x256xf32>
    %97 = arith.addf %91, %96 : vector<4x256xf32>
    %c0_62 = arith.constant 0 : index
    %c8 = arith.constant 8 : index
    %c0_63 = arith.constant 0 : index
    %c0_64 = arith.constant 0 : index
    %98 = vector.load %arg1[%c0_62, %c8, %c0_63, %c0_64] : memref<1x9x4x256xf32, #tpu.memory_space<vmem>>, vector<1x1x4x256xf32>
    %99 = vector.shape_cast %98 : vector<1x1x4x256xf32> to vector<4x256xf32>
    %c0_65 = arith.constant 0 : index
    %c8_66 = arith.constant 8 : index
    %100 = vector.load %arg4[%c0_65, %c8_66] : memref<4x9xf32, #tpu.memory_space<vmem>>, vector<4x1xf32>
    %101 = vector.broadcast %100 : vector<4x1xf32> to vector<4x256xf32>
    %102 = arith.mulf %101, %99 : vector<4x256xf32>
    %103 = arith.addf %97, %102 : vector<4x256xf32>
    %104 = arith.mulf %44, %103 : vector<4x256xf32>
    %105 = arith.mulf %104, %49 : vector<4x256xf32>
    %cst = arith.constant 6.180470e-01 : f32
    %106 = vector.broadcast %cst : f32 to vector<4x256xf32>
    %107 = arith.mulf %105, %106 : vector<4x256xf32>
    %c0_67 = arith.constant 0 : index
    %c0_68 = arith.constant 0 : index
    %c0_69 = arith.constant 0 : index
    %108 = vector.load %arg8[%c0_67, %c0_68, %c0_69] : memref<1x4x256xf32, #tpu.memory_space<vmem>>, vector<1x4x256xf32>
    %109 = vector.shape_cast %108 : vector<1x4x256xf32> to vector<4x256xf32>
    %110 = vector.shape_cast %107 : vector<4x256xf32> to vector<1x4x256xf32>
    tpu.vector_store %arg8[%c0_67, %c0_68, %c0_69], %110 {strides = array<i32>} : memref<1x4x256xf32, #tpu.memory_space<vmem>>, vector<1x4x256xf32>,
    return
  }
  func.func @transform_0(%arg0: i32) -> (i32, i32, i32, i32) {
    %c0_i32 = arith.constant 0 : i32
    %c0_i32_0 = arith.constant 0 : i32
    %c0_i32_1 = arith.constant 0 : i32
    %c0_i32_2 = arith.constant 0 : i32
    return %arg0, %c0_i32, %c0_i32_0, %c0_i32_1 : i32, i32, i32, i32
  }
  func.func @transform_1(%arg0: i32) -> (i32, i32) {
    %c0_i32 = arith.constant 0 : i32
    %c0_i32_0 = arith.constant 0 : i32
    %c0_i32_1 = arith.constant 0 : i32
    return %c0_i32, %c0_i32_0 : i32, i32
  }
  func.func @transform_2(%arg0: i32) -> (i32, i32) {
    %c0_i32 = arith.constant 0 : i32
    %c0_i32_0 = arith.constant 0 : i32
    %c0_i32_1 = arith.constant 0 : i32
    return %c0_i32, %c0_i32_0 : i32, i32
  }
  func.func @transform_3(%arg0: i32) -> (i32, i32) {
    %c0_i32 = arith.constant 0 : i32
    %c0_i32_0 = arith.constant 0 : i32
    %c0_i32_1 = arith.constant 0 : i32
    return %c0_i32, %c0_i32_0 : i32, i32
  }
  func.func @transform_4(%arg0: i32) -> (i32, i32) {
    %c0_i32 = arith.constant 0 : i32
    %c0_i32_0 = arith.constant 0 : i32
    %c0_i32_1 = arith.constant 0 : i32
    return %c0_i32, %c0_i32_0 : i32, i32
  }
  func.func @transform_5(%arg0: i32) -> (i32, i32) {
    %c0_i32 = arith.constant 0 : i32
    %c0_i32_0 = arith.constant 0 : i32
    %c0_i32_1 = arith.constant 0 : i32
    return %c0_i32, %c0_i32_0 : i32, i32
  }
  func.func @transform_6(%arg0: i32) -> (i32, i32) {
    %c0_i32 = arith.constant 0 : i32
    %c0_i32_0 = arith.constant 0 : i32
    %c0_i32_1 = arith.constant 0 : i32
    return %c0_i32, %c0_i32_0 : i32, i32
  }
  func.func @transform_7(%arg0: i32) -> (i32, i32, i32) {
    %c0_i32 = arith.constant 0 : i32
    %c0_i32_0 = arith.constant 0 : i32
    %c0_i32_1 = arith.constant 0 : i32
    return %arg0, %c0_i32, %c0_i32_0 : i32, i32, i32
  }
}

</mosaic_0001>

<bundles_post_ra>
// kernel: tpu_custom_call.1
= control target key start
LH: loop header
LB: loop body
LE: loop exit
PB: predicated region body
PF: predicated region fallthrough
CT: control target
= control target key end

     0   :  { %12 = vsyncpa [#allocation3], 0  ;;  %s1172_s0 = inlined_call_operand.hbm [shape: f32[2,9,4,256], index: 0, kind: input, shape index: {}]   ;;  %s1173_s1 = inlined_call_operand.vmem [shape: f32[4,4], index: 1, kind: input, shape index: {}]   ;;  %s1174_s2 = inlined_call_operand.vmem [shape: f32[4,1], index: 2, kind: input, shape index: {}]   ;;  %s1175_s3 = inlined_call_operand.vmem [shape: f32[4,9], index: 3, kind: input, shape index: {}]   ;;  %s1176_s4 = inlined_call_operand.vmem [shape: f32[4,1], index: 4, kind: input, shape index: {}]   ;;  %s1177_s5 = inlined_call_operand.vmem [shape: f32[4,4], index: 5, kind: input, shape index: {}]   ;;  %s1178_s6 = inlined_call_operand.vmem [shape: f32[4,1], index: 6, kind: input, shape index: {}]   ;;  %s1179_s7 = inlined_call_operand.hbm [shape: f32[2,4,256], index: 7, kind: output, shape index: {}]  }
   0x1   :  { %14 = vsyncpa [#allocation3 + $0x1], 0 }
   0x2   :  { %15 = vsyncpa [#allocation4], 0 }
   0x3   :  { %17 = vsyncpa [#allocation4 + $0x1], 0  ;;  %s939_s24 = smov 0   ;;  %s941_s25 = smov 0  }
   0x4   :  { %s943_s26 = smov 0   ;;  %s945_s27 = smov 0  }
   0x5 LB: > { %s960_s28 = sadd.s32 4294967295, %s884_s27   ;;  %s685_s29 = sadd.s32 4294967294, %s884_s27   ;;  %s884_s27 = sphi %s945_s27, %s1191_s27   ;;  %s880_s26 = sphi %s943_s26, %s1190_s26   ;;  %s876_s25 = sphi %s941_s25, %s1189_s25   ;;  %s872_s24 = sphi %s939_s24, %s1188_s24  }
   0x6   : > { %s964_s30 = sadd.s32 1, %s884_s27   ;;  %s30_s8 = sadd.s32 1, %s880_s26 }
   0x7   : > { %s27_s9 = ssub.s32 %s884_s27, %s964_s30  ;;  %p37_p0 = scmp.ne.s32.totalorder %s880_s26, %s876_s25 }
   0x8   : > { %p28_p1 = scmp.eq.s32.totalorder %s27_s9, 0  ;;  %p38_p2 = scmp.eq.s32.totalorder %s884_s27, 0 }
   0x9   : > { %p43_p3 = scmp.ne.s32.totalorder %s876_s25, %s872_s24  ;;  %p44_p4 = scmp.eq.s32.totalorder %s960_s28, 0 }
   0xa   : > { %s976_s10 = scalar_select %p28_p1, %s880_s26, %s30_s8  }
   0xb   : > { %p39_p5 = por %p38_p2, %p37_p0  ;;  %p978_p6 = por %p44_p4, %p43_p3 }
   0xc   : > { %p193_p7 = scmp.eq.s32.totalorder %s960_s28, 1  ;;  %p199_p8 = scmp.eq.s32.totalorder %s685_s29, 1 }
   0xd   : > { %p720_p10 = scmp.lt.s32.totalorder %s884_s27, 2  ;;  %s237_s14 = sand.u32 1, %s880_s26  }
   0xe   : > { %p985_p11 = por %p193_p7, %p37_p0  ;;  %p989_p12 = por %p199_p8, %p43_p3 }
   0xf   : > { %s706_s15 = smul.u32 1152, %s884_s27  ;;  %p1000_p13 = pnand %p720_p10, %p39_p5 }
  0x10   : > { %s1182_s12 = scalar_select %p985_p11, 1, 0 }
  0x11   : > { %s1183_s13 = scalar_select %p989_p12, 1, 0 }
  0x12   : > { %s705_s16 = smul.u32 72, %s237_s14  ;;  %s998_s19 = scalar_lea.hbm %s1172_s0, %s706_s15 }
  0x13   : > { %s1006_s23 = scalar_lea.sflag [#allocation3], %s237_s14  ;;  %s788_s29 = scalar_lea.hbm %s998_s19, 1152 }
  0x14   : > { %s241_s21 = scalar_lea.vmem [#allocation2], %s705_s16  ;;  %p789_p0 = scmp.ne.s32.totalorder %s998_s19, %s788_s29 }
  0x15   : > { %s248_s22 = sshll.u32 %s241_s21, 4  ;;  %p790_p1 = pneg %p1000_p13  ;;  %s1004_s22 = int_to_ptr.vmem [resolvable:$true] %s248_s22 }
  0x16   : > { %s793_s15 = scalar_lea.hbm %s1172_s0, 2304  ;;  %p794_p4 = scmp.lt.u32.totalorder %s998_s19, %s1172_s0 }
  0x17   : > { %p791_p2 = pnand %p790_p1, %p789_p0  ;;  %p795_p5 = scmp.lt.u32.totalorder %s793_s15, %s788_s29 }
  0x18   : > { %p797_p8 = scmp.lt.u32.totalorder %s788_s29, %s998_s19 }
  0x19   : > { %p792_p3 = pneg %p791_p2  ;;  %p796_p7 = por %p795_p5, %p794_p4 }
  0x1b   : > { %p798_p10 = por %p797_p8, %p796_p7 }
  0x1d   : > { %p799_p9 = pnand %p798_p10, %p792_p3 }
  0x1f   : > { %802 = shalt.err (!%p799_p9)
}
  0x20   : > { %s803_s14 = scalar_lea.vmem %s1004_s22, 1152  ;;  %s886_s16 = smov [#allocation2]  }
  0x21   : > { %p804_p0 = scmp.ne.s32.totalorder %s1004_s22, %s803_s14  ;;  %s808_s21 = sshll.u32 %s886_s16, 4  ;;  %s809_s21 = int_to_ptr.vmem [resolvable:$false] %s808_s21 }
  0x22   : > { %s810_s8 = scalar_lea.vmem %s809_s21, 2304  ;;  %p811_p11 = scmp.lt.s32.totalorder %s1004_s22, %s809_s21 }
  0x23   : > { %p806_p2 = pnand %p804_p0, %p790_p1  ;;  %p812_p4 = scmp.lt.s32.totalorder %s810_s8, %s803_s14 }
  0x25   : > { %p807_p12 = pneg %p806_p2  ;;  %p813_p5 = por %p812_p4, %p811_p11 }
  0x27   : > { %p814_p7 = pnand %p813_p5, %p807_p12 }
  0x29   : > { %817 = shalt.err (!%p814_p7)
}
  0x2a   : > { %s887_s29 = smov 128   ;;  %s888_s9 = smov 8  }
  0x2b   : > { %715 = dma.hbm_to_vmem [thread:$0]  (!%p1000_p13), %s998_s19, 1152, %s1004_s22, %s1006_s23, %s887_s29, %s887_s29, %s888_s9  }
  0x2c   : > { %p689_p9 = scmp.ge.s32.totalorder %s884_s27, 1  ;;  %p256_p1 = scmp.lt.s32.totalorder %s884_s27, 3 }
  0x2e   : > { %p257_p3 = pnand %p689_p9, %p256_p1 }
  0x2f   : > { %s1037_s15 = sand.u32 (!%p257_p3), 1, %s876_s25  }
  0x30   : > { %260 = sbr.rel (%p257_p3) target bundleno = 261 (0x105), region = 48  ;;  %s263_s18 = scalar_lea.sflag (!%p257_p3), [#allocation3], %s1037_s15 }
  0x31   : > { %s707_s17 = smul.u32 (!%p257_p3), 72, %s1037_s15 }
  0x33   : > { %s1041_s14 = scalar_lea.vmem (!%p257_p3), [#allocation2], %s707_s17 }
  0x37   : > { %863 = dma.done.wait (%p978_p6), %s263_s18, 1152  }
  0x38   : > { %865 = vsyncadd (%p978_p6), %s263_s18, 4294966144  ;;  %v889_v0 = vmov 1   ;;  %v890_v1 = vmov 0   ;;  %v474_v2 = vld [vmem:[%s1175_s3] sm:$0xf]  ;;  %v891_v6 = vmov 2   ;;  %v308_v37 = vlaneseq }
  0x39   : > { %766 = vset.pattern.permute.xlu1 %v889_v0  ;;  %765 = vset.pattern.permute.xlu0 %v890_v1  ;;  %v454_v3 = vld [vmem:[%s1175_s3] sm:$0xf]  ;;  %v892_v9 = vmov 3   ;;  %v893_v10 = vmov 4   ;;  %v894_v13 = vmov 5   ;;  %v895_v18 = vmov 7  }
  0x3a   : > { %477 = vperm.xlu1 %766, %v474_v2   ;;  %457 = vperm.xlu0 %765, %v454_v3   ;;  %v452_v4 = vld [vmem:[%s1176_s4] sm:$0xf]  ;;  %v896_v19 = vmov 6   ;;  %v897_v22 = vmov 8   ;;  %v692_v30 = vld [vmem:[%s1041_s14 + $0x8] sm:$0xff]  ;;  %v693_v35 = vld [vmem:[%s1041_s14 + $0x10] sm:$0xff] }
  0x3b   : > { %v489_v5 = vld [vmem:[%s1175_s3] sm:$0xf]  ;;  %v481_v36 = vcombine.high %v692_v30, %v692_v30  ;;  %v496_v41 = vcombine.high %v693_v35, %v693_v35  ;;  %v309_v46 = vshrl.u32 %v308_v37, 7  ;;  %v695_v61 = vld [vmem:[%s1041_s14 + $0x28] sm:$0xff]  ;;  %s704_s16 = sshll.u32 %s960_s28, 7  ;;  %s601_s17 = scalar_lea.sflag [#allocation4], %s1037_s15 }
  0x3c   : > { %v504_v7 = vld [vmem:[%s1175_s3] sm:$0xf]  ;;  %s1128_s9 = scalar_lea.hbm %s1179_s7, %s704_s16  ;;  %p1185_p11 = scmp.ne.s32.totalorder %s1182_s12, 0 }
  0x3d   : > { %v517_v8 = vld [vmem:[%s1175_s3] sm:$0xf]  ;;  %v310_v54 = vsub.s32 0, %v309_v46  ;;  %v314_v55 = vsub.s32 4, %v309_v46  ;;  %s898_s28 = smov [#allocation5]  }
  0x3e   : > { %767 = vset.pattern.permute.xlu1 %v891_v6  ;;  %467 = vperm.xlu0 %765, %v452_v4   ;;  %v531_v11 = vld [vmem:[%s1175_s3] sm:$0xf]  ;;  %v538_v4 = vcombine.high %v695_v61, %v695_v61  ;;  %s822_s19 = sshll.u32 %s898_s28, 4  ;;  %s823_s19 = int_to_ptr.vmem [resolvable:$false] %s822_s19 }
  0x3f   : > { %492 = vperm.xlu1 %767, %v489_v5   ;;  %v301_v12 = vld [vmem:[%s1173_s1] sm:$0xf]  ;;  %v696_v5 = vld [vmem:[%s1041_s14 + $0x30] sm:$0xff]  ;;  %s824_s20 = scalar_lea.vmem %s823_s19, 256 }
  0x40   : > { %v299_v14 = vld [vmem:[%s1174_s2] sm:$0xf] }
  0x41   : > { %v335_v15 = vld [vmem:[%s1177_s5] sm:$0xf] }
  0x42   : > { %768 = vset.pattern.permute.xlu0 %v892_v9  ;;  %v561_v16 = vld [vmem:[%s1175_s3] sm:$0xf] }
  0x43   : > { %769 = vset.pattern.permute.xlu1 %v893_v10  ;;  %507 = vperm.xlu0 %768, %v504_v7   ;;  %v546_v17 = vld [vmem:[%s1175_s3] sm:$0xf]  ;;  %v394_v7 = vsub.s32 6, %v309_v46 }
  0x44   : > { %520 = vperm.xlu1 %769, %v517_v8   ;;  %v576_v20 = vld [vmem:[%s1175_s3] sm:$0xf] }
  0x45   : > { %v300_v21 = vld [vmem:[%s1178_s6] sm:$0xf] }
  0x46   : > { %v453_v26 = vld [vmem:[%s1041_s14] sm:$0xff]  ;;  %v694_v42 = vld [vmem:[%s1041_s14 + $0x18] sm:$0xff] }
  0x47   : > { %771 = vset.pattern.permute.xlu0 %v894_v13  ;;  %v461_v29 = vcombine.high %v453_v26, %v453_v26  ;;  %v511_v47 = vcombine.high %v694_v42, %v694_v42  ;;  %v1100_v53 = vld [vmem:[%s1041_s14 + $0x20] sm:$0xff] }
  0x48   : > { %770 = vset.pattern.permute.xlu1 %v890_v1  ;;  %534 = vperm.xlu0 %771, %v531_v11   ;;  %v523_v56 = vcombine.high %v1100_v53, %v1100_v53  ;;  %v311_v2 = vrot.slane %v1100_v53, %v310_v54  ;;  %v315_v3 = vrot.slane %v1100_v53, %v314_v55 }
  0x49   : > { %304 = vperm.xlu1 %770, %v301_v12  }
  0x4c   : > { %772 = vset.pattern.permute.xlu0 %v889_v0  ;;  %v356_v0 = vsub.s32 1, %v309_v46 }
  0x4d   : > { %351 = vperm.xlu0 %772, %v301_v12   ;;  %330 = vperm.xlu1 %770, %v299_v14  }
  0x4e   : > { %v357_v13 = vrot.slane %v1100_v53, %v356_v0 }
  0x51   : > { %377 = vperm.xlu0 %772, %v335_v15   ;;  %338 = vperm.xlu1 %770, %v335_v15  }
  0x55   : > { %776 = vset.pattern.permute.xlu0 %v895_v18  ;;  %773 = vset.pattern.permute.xlu1 %v896_v19  ;;  %v553_v18 = vcombine.high %v696_v5, %v696_v5  ;;  %v697_v19 = vld [vmem:[%s1041_s14 + $0x38] sm:$0xff] }
  0x56   : > { %564 = vperm.xlu0 %776, %v561_v16   ;;  %549 = vperm.xlu1 %773, %v546_v17   ;;  %v321_v16 = vrot.slane %v311_v2, %v310_v54  ;;  %v325_v17 = vrot.slane %v315_v3, %v310_v54 }
  0x5a   : > { %778 = vset.pattern.permute.xlu0 %v897_v22  ;;  %774 = vset.pattern.permute.xlu1 %v890_v1  ;;  %v360_v1 = vsub.s32 5, %v309_v46  ;;  %v424_v22 = vsub.s32 3, %v309_v46 }
  0x5b   : > { %579 = vperm.xlu0 %778, %v576_v20   ;;  %345 = vperm.xlu1 %774, %v300_v21   ;;  %v395_v21 = vrot.slane %v1100_v53, %v394_v7 }
  0x5c   : > { %v361_v14 = vrot.slane %v1100_v53, %v360_v1 }
  0x5f   : > { %775 = vset.pattern.permute.xlu1 %v891_v6  ;;  %v390_v6 = vsub.s32 2, %v309_v46 }
  0x60   : > { %385 = vperm.xlu1 %775, %v301_v12  }
  0x61   : > { %v391_v20 = vrot.slane %v1100_v53, %v390_v6 }
  0x64   : > { %411 = vperm.xlu1 %775, %v335_v15  }
  0x68   : > { %777 = vset.pattern.permute.xlu1 %v892_v9 }
  0x69   : > { %419 = vperm.xlu1 %777, %v301_v12  }
  0x6d   : > { %445 = vperm.xlu1 %777, %v335_v15  }
  0xb9   : > { %v478_v23 = vpop.permute.xlu1 %477  ;;  %v458_v24 = vpop.permute.xlu0 %457 }
  0xba   : > { %v463_v32 = vmul.f32 %v458_v24, %v453_v26  ;;  %v464_v33 = vmul.f32 %v461_v29, %v458_v24  ;;  %v483_v43 = vmul.f32 %v692_v30, %v478_v23  ;;  %v484_v44 = vmul.f32 %v481_v36, %v478_v23 }
  0xbb   : > { %v428_v23 = vsub.s32 7, %v309_v46  ;;  %v371_v29 = vrot.slane %v361_v14, %v356_v0 }
  0xbd   : > { %v468_v27 = vpop.permute.xlu0 %467 }
  0xbe   : > { %v493_v25 = vpop.permute.xlu1 %492  ;;  %v470_v39 = vadd.f32 %v468_v27, %v463_v32  ;;  %v471_v40 = vadd.f32 %v468_v27, %v464_v33  ;;  %v568_v33 = vcombine.high %v697_v19, %v697_v19 }
  0xbf   : > { %v498_v51 = vmul.f32 %v693_v35, %v493_v25  ;;  %v499_v52 = vmul.f32 %v496_v41, %v493_v25 }
  0xc0   : > { %v485_v49 = vadd.f32 %v483_v43, %v470_v39  ;;  %v486_v50 = vadd.f32 %v484_v44, %v471_v40  ;;  %v401_v39 = vrot.slane %v391_v20, %v390_v6  ;;  %v405_v40 = vrot.slane %v395_v21, %v390_v6  ;;  %v698_v43 = vld [vmem:[%s1041_s14 + $0x40] sm:$0xff]  ;;  %s690_s14 = sshll.u32 %s1037_s15, 3 }
  0xc1   : > { %v425_v44 = vrot.slane %v1100_v53, %v424_v22  ;;  %s296_s21 = scalar_lea.vmem [#allocation5], %s690_s14 }
  0xc2   : > { %v508_v34 = vpop.permute.xlu0 %507  ;;  %v500_v57 = vadd.f32 %v498_v51, %v485_v49  ;;  %v501_v58 = vadd.f32 %v499_v52, %v486_v50  ;;  %s615_s11 = sshll.u32 %s296_s21, 4  ;;  %s1130_s11 = int_to_ptr.vmem [resolvable:$true] %s615_s11 }
  0xc3   : > { %v521_v28 = vpop.permute.xlu1 %520  ;;  %v513_v59 = vmul.f32 %v694_v42, %v508_v34  ;;  %v514_v60 = vmul.f32 %v511_v47, %v508_v34  ;;  %s818_s18 = scalar_lea.vmem %s1130_s11, 128  ;;  %p825_p8 = scmp.lt.s32.totalorder %s1130_s11, %s823_s19 }
  0xc4   : > { %v525_v10 = vmul.f32 %v1100_v53, %v521_v28  ;;  %v526_v11 = vmul.f32 %v523_v56, %v521_v28  ;;  %v367_v28 = vrot.slane %v357_v13, %v356_v0  ;;  %v583_v56 = vcombine.high %v698_v43, %v698_v43  ;;  %p819_p6 = scmp.ne.s32.totalorder %s1130_s11, %s818_s18  ;;  %p826_p10 = scmp.lt.s32.totalorder %s824_s20, %s818_s18 }
  0xc5   : > { %v515_v8 = vadd.f32 %v513_v59, %v500_v57  ;;  %v516_v9 = vadd.f32 %v514_v60, %v501_v58 }
  0xc6   : > { %p820_p12 = pnand %p819_p6, %p1185_p11  ;;  %p827_p0 = por %p826_p10, %p825_p8 }
  0xc7   : > { %v535_v45 = vpop.permute.xlu0 %534  ;;  %v527_v24 = vadd.f32 %v525_v10, %v515_v8  ;;  %v528_v25 = vadd.f32 %v526_v11, %v516_v9 }
  0xc8   : > { %v1091_v31 = vpop.permute.xlu1 %304  ;;  %v540_v26 = vmul.f32 %v695_v61, %v535_v45  ;;  %v541_v27 = vmul.f32 %v538_v4, %v535_v45  ;;  %v429_v45 = vrot.slane %v1100_v53, %v428_v23  ;;  %v435_v53 = vrot.slane %v425_v44, %v424_v22  ;;  %p821_p13 = pneg %p820_p12 }
  0xc9   : > { %v326_v36 = vmul.f32 %v321_v16, %v1091_v31  ;;  %v327_v37 = vmul.f32 %v325_v17, %v1091_v31 }
  0xca   : > { %v542_v41 = vadd.f32 %v540_v26, %v527_v24  ;;  %v543_v42 = vadd.f32 %v541_v27, %v528_v25  ;;  %p828_p2 = pnand %p827_p0, %p821_p13 }
  0xcc   : > { %v1094_v38 = vpop.permute.xlu1 %330  ;;  %v352_v62 = vpop.permute.xlu0 %351 }
  0xcd   : > { %v372_v46 = vmul.f32 %v367_v28, %v352_v62  ;;  %v373_v47 = vmul.f32 %v371_v29, %v352_v62  ;;  %v333_v49 = vadd.f32 %v1094_v38, %v326_v36  ;;  %v334_v50 = vadd.f32 %v1094_v38, %v327_v37 }
  0xcf   : > { %v374_v62 = vadd.f32 %v372_v46, %v333_v49  ;;  %v375_v0 = vadd.f32 %v373_v47, %v334_v50 }
  0xd0   : > { %v1097_v48 = vpop.permute.xlu1 %338  ;;  %v378_v12 = vpop.permute.xlu0 %377 }
  0xd1   : > { %v341_v59 = vmul.f32 %v1097_v48, %v321_v16  ;;  %v342_v60 = vmul.f32 %v1097_v48, %v325_v17  ;;  %v380_v1 = vmul.f32 %v378_v12, %v367_v28  ;;  %v381_v2 = vmul.f32 %v378_v12, %v371_v29 }
  0xd5   : > { %v550_v63 = vpop.permute.xlu1 %549  ;;  %v565_v34 = vpop.permute.xlu0 %564 }
  0xd6   : > { %v555_v30 = vmul.f32 %v696_v5, %v550_v63  ;;  %v556_v32 = vmul.f32 %v553_v18, %v550_v63  ;;  %v570_v54 = vmul.f32 %v697_v19, %v565_v34  ;;  %v571_v55 = vmul.f32 %v568_v33, %v565_v34 }
  0xd7   : > { %v439_v63 = vrot.slane %v429_v45, %v424_v22 }
  0xd8   : > { %v557_v51 = vadd.f32 %v555_v30, %v542_v41  ;;  %v558_v52 = vadd.f32 %v556_v32, %v543_v42 }
  0xda   : > { %v346_v15 = vpop.permute.xlu1 %345  ;;  %v580_v61 = vpop.permute.xlu0 %579  ;;  %v572_v38 = vadd.f32 %v570_v54, %v557_v51  ;;  %v573_v3 = vadd.f32 %v571_v55, %v558_v52 }
  0xdb   : > { %v348_v4 = vadd.f32 %v346_v15, %v341_v59  ;;  %v349_v5 = vadd.f32 %v346_v15, %v342_v60  ;;  %v585_v6 = vmul.f32 %v698_v43, %v580_v61  ;;  %v586_v7 = vmul.f32 %v583_v56, %v580_v61 }
  0xdd   : > { %v382_v16 = vadd.f32 %v380_v1, %v348_v4  ;;  %v383_v17 = vadd.f32 %v381_v2, %v349_v5  ;;  %v587_v12 = vadd.f32 %v585_v6, %v572_v38  ;;  %v588_v20 = vadd.f32 %v586_v7, %v573_v3 }
  0xdf   : > { %v386_v35 = vpop.permute.xlu1 %385 }
  0xe0   : > { %v406_v57 = vmul.f32 %v401_v39, %v386_v35  ;;  %v407_v58 = vmul.f32 %v405_v40, %v386_v35 }
  0xe2   : > { %v408_v8 = vadd.f32 %v406_v57, %v374_v62  ;;  %v409_v9 = vadd.f32 %v407_v58, %v375_v0 }
  0xe3   : > { %v412_v31 = vpop.permute.xlu1 %411 }
  0xe4   : > { %v414_v11 = vmul.f32 %v412_v31, %v401_v39  ;;  %v415_v13 = vmul.f32 %v412_v31, %v405_v40 }
  0xe6   : > { %v416_v15 = vadd.f32 %v414_v11, %v382_v16  ;;  %v417_v22 = vadd.f32 %v415_v13, %v383_v17 }
  0xe8   : > { %v420_v10 = vpop.permute.xlu1 %419 }
  0xe9   : > { %v440_v48 = vmul.f32 %v435_v53, %v420_v10  ;;  %v441_v14 = vmul.f32 %v439_v63, %v420_v10 }
  0xeb   : > { %v442_v18 = vadd.f32 %v440_v48, %v408_v8  ;;  %v443_v19 = vadd.f32 %v441_v14, %v409_v9 }
  0xec   : > { %v446_v21 = vpop.permute.xlu1 %445 }
  0xed   : > { %v448_v23 = vmul.f32 %v446_v21, %v435_v53  ;;  %v449_v24 = vmul.f32 %v446_v21, %v439_v63  ;;  %v589_v25 = vmul.f32 %v587_v12, %v442_v18  ;;  %v590_v26 = vmul.f32 %v588_v20, %v443_v19 }
  0xef   : > { %v450_v27 = vadd.f32 %v448_v23, %v416_v15  ;;  %v451_v28 = vadd.f32 %v449_v24, %v417_v22 }
  0xf1   : > { %v591_v29 = vmul.f32 %v589_v25, %v450_v27  ;;  %v592_v30 = vmul.f32 %v590_v26, %v451_v28 }
  0xf3   : > { %v593_v32 = vmul.f32 0.618047, %v591_v29  ;;  %v594_v33 = vmul.f32 0.618047, %v592_v30 }
  0xf5   : > { %v597_v34 = vcombine.low %v593_v32, %v594_v33 }
  0xf7   : > { %599 = vst [vmem:[%s296_s21] sm:$0xff] %v597_v34 }
  0xf8   : > { %831 = shalt.err (!%p828_p2)
}
  0xf9   : > { %s832_s15 = scalar_lea.hbm %s1128_s9, 128  ;;  %s836_s14 = scalar_lea.hbm %s1179_s7, 256 }
  0xfa   : > { %p833_p4 = scmp.ne.s32.totalorder %s1128_s9, %s832_s15  ;;  %p837_p9 = scmp.lt.u32.totalorder %s1128_s9, %s1179_s7 }
  0xfb   : > { %p838_p1 = scmp.lt.u32.totalorder %s836_s14, %s832_s15  ;;  %p840_p6 = scmp.lt.u32.totalorder %s832_s15, %s1128_s9 }
  0xfc   : > { %p834_p5 = pnand %p833_p4, %p1185_p11 }
  0xfd   : > { %p839_p3 = por %p838_p1, %p837_p9 }
  0xfe   : > { %p835_p7 = pneg %p834_p5 }
  0xff   : > { %p841_p12 = por %p840_p6, %p839_p3 }
 0x101   : > { %p842_p13 = pnand %p841_p12, %p835_p7 }
 0x103   : > { %845 = shalt.err (!%p842_p13)
}
 0x104   : > { %710 = dma.vmem_to_hbm [thread:$0]  (%p1185_p11), %s1130_s11, 128, %s1128_s9, %s601_s17  }
 0x105 PF: > { %s627_s8 = sand.u32 1, %s872_s24   ;;  %p1186_p8 = scmp.ne.s32.totalorder %s1183_s13, 0 }
 0x106   : > { %p1187_p10 = scmp.ge.s32.totalorder %s884_s27, 2  ;;  %s628_s29 = scalar_lea.sflag [#allocation4], %s627_s8 }
 0x108   : > { %p717_p0 = pnand %p1187_p10, %p1186_p8 }
 0x10a   : > { %867 = dma.done.wait (!%p717_p0), %s628_s29, 128  }
 0x10b   : > { %869 = vsyncadd (!%p717_p0), %s628_s29, 4294967168  ;;  %p20_p2 = scmp.ge.s32.totalorder %s964_s30, 4   ;;  %s1188_s24 = smov %s876_s25 }
 0x10c   : > { %s1189_s25 = smov %s880_s26  ;;  %s1190_s26 = smov %s976_s10 }
 0x10d   : > { %s1191_s27 = smov %s964_s30  ;;  %22 = sbr.rel (!%p20_p2) target bundleno = 5 (0x5), region = 101 }
 0x114   :  { %633 = vsyncpa [#allocation3], 1 }
 0x115   :  { %635 = vsyncpa [#allocation3 + $0x1], 1 }
 0x116   :  { %636 = vsyncpa [#allocation4], 1 }
 0x117   :  { %638 = vsyncpa [#allocation4 + $0x1], 1 }

</bundles_post_ra>
